<compile_context>
chip_gen: v7x
topology: tpu7x:2x2x1
jax: 0.10.0
libtpu: 0.0.40
codegen_flags: <defaults>
</compile_context>

<pallas_src>
import functools

import jax
import jax.numpy as jnp
import numpy as np
from jax.experimental import pallas as pl
from jax.experimental.pallas import tpu as pltpu


# ----------------------------------------------------------------------------
# Fused kernel: q-proj(+LoRA+scale) -> kv-proj(audio+LoRA) -> attention -> out
# ----------------------------------------------------------------------------
def fused_audio_cross_attn_kernel(
    x_ref,      # (Tn, C)      image/video tokens tile
    af_ref,     # (M, A)       audio features for this batch
    wq_ref,     # (C, C)       q projection, LoRA + 1/sqrt(hd) folded in
    bq_ref,     # (1, C)
    wkv_ref,    # (A, 2C)      audio_proj + k/v projections + LoRA folded in
    bkv_ref,    # (1, 2C)
    wo_ref,     # (C, C)       out projection (pre-transposed)
    bo_ref,     # (1, C)
    o_ref,      # (Tn, C)
    *,
    num_heads,
):
    x = x_ref[...]
    af = af_ref[...]
    C = x.shape[-1]
    hd = C // num_heads

    # q projection (attention scale + LoRA already folded into wq/bq)
    q = jnp.dot(x, wq_ref[...], preferred_element_type=jnp.float32) + bq_ref[...]

    # k and v projections, computed directly from audio features in one matmul
    kv = jnp.dot(af, wkv_ref[...], preferred_element_type=jnp.float32) + bkv_ref[...]

    # Per-head softmax attention; results concatenated lane-dense into (Tn, C).
    outs = []
    for h in range(num_heads):            # static unroll (num_heads is small)
        lo = h * hd
        qh = q[:, lo:lo + hd]              # (Tn, hd)
        kh = kv[:, lo:lo + hd]             # (M, hd)
        vh = kv[:, C + lo:C + lo + hd]     # (M, hd)

        s = jnp.dot(qh, kh.T, preferred_element_type=jnp.float32)   # (Tn, M)
        s = s - jnp.max(s, axis=-1, keepdims=True)
        p = jnp.exp(s)
        p = p * pl.reciprocal(jnp.sum(p, axis=-1, keepdims=True), approx=True)
        outs.append(jnp.dot(p, vh, preferred_element_type=jnp.float32))
    attn = jnp.concatenate(outs, axis=-1)  # (Tn, C) — lane-dense output slab

    # Output projection.
    o_ref[...] = (
        jnp.dot(attn, wo_ref[...], preferred_element_type=jnp.float32) + bo_ref[...]
    )


# ----------------------------------------------------------------------------
# Wrapper: fold LoRA / audio_proj / attention scale, then one pallas_call
# ----------------------------------------------------------------------------
@functools.partial(jax.jit, static_argnames=("num_heads",))
def audio_cross_attention_forward(x, audio_features, params, *, num_heads):
    B, N, C = x.shape
    _, M, A = audio_features.shape
    hd = C // num_heads
    attn_scale = hd ** (-0.5)
    rank = params["q_lora_A"].shape[0]
    lora_scaling = 1.0 / rank             # MultiTalkLoRALayer scaling

    eye = jnp.eye(C, dtype=jnp.float32)

    def lora_mix(lora_a, lora_b):
        # MultiTalkLoRALayer: y = y0 + (y0 @ A^T @ B^T) * s == y0 @ (I + s A^T B^T)
        return eye + lora_scaling * (lora_a.T @ lora_b.T)

    # q projection: fold LoRA and the 1/sqrt(hd) attention scale.
    mq = lora_mix(params["q_lora_A"], params["q_lora_B"])
    wq = (params["q_w"].T @ mq) * attn_scale            # (C, C)
    bq = (params["q_b"] @ mq) * attn_scale              # (C,)

    # k/v projections: fold LoRA, then fold audio_proj (ap only feeds k/v).
    mk = lora_mix(params["k_lora_A"], params["k_lora_B"])
    mv = lora_mix(params["v_lora_A"], params["v_lora_B"])
    wk_r = params["k_w"].T @ mk                         # (C, C)
    wv_r = params["v_w"].T @ mv                         # (C, C)
    bk_r = params["k_b"] @ mk                           # (C,)
    bv_r = params["v_b"] @ mv                           # (C,)
    wa_t = params["audio_w"].T                          # (A, C)
    wkv = jnp.concatenate([wa_t @ wk_r, wa_t @ wv_r], axis=1)          # (A, 2C)
    bkv = jnp.concatenate(
        [params["audio_b"] @ wk_r + bk_r, params["audio_b"] @ wv_r + bv_r], axis=0
    )                                                                  # (2C,)

    wo = params["out_w"].T                              # (C, C)
    bo = params["out_b"]                                # (C,)

    # Tile the token dimension so the same kernel scales to large N.
    tile_n = N if N <= 512 else 512
    grid = (B, pl.cdiv(N, tile_n))

    kernel = functools.partial(fused_audio_cross_attn_kernel, num_heads=num_heads)

    return pl.pallas_call(
        kernel,
        out_shape=jax.ShapeDtypeStruct((B, N, C), jnp.float32),
        grid=grid,
        in_specs=[
            pl.BlockSpec((None, tile_n, C), lambda b, n: (b, n, 0)),   # x
            pl.BlockSpec((None, M, A), lambda b, n: (b, 0, 0)),        # audio feats
            pl.BlockSpec((C, C), lambda b, n: (0, 0)),                 # wq (resident)
            pl.BlockSpec((1, C), lambda b, n: (0, 0)),                 # bq
            pl.BlockSpec((A, 2 * C), lambda b, n: (0, 0)),             # wkv
            pl.BlockSpec((1, 2 * C), lambda b, n: (0, 0)),             # bkv
            pl.BlockSpec((C, C), lambda b, n: (0, 0)),                 # wo
            pl.BlockSpec((1, C), lambda b, n: (0, 0)),                 # bo
        ],
        out_specs=pl.BlockSpec((None, tile_n, C), lambda b, n: (b, n, 0)),
        compiler_params=pltpu.CompilerParams(
            dimension_semantics=("parallel", "parallel")
        ),
    )(
        x,
        audio_features,
        wq,
        bq.reshape(1, C),
        wkv,
        bkv.reshape(1, 2 * C),
        wo,
        bo.reshape(1, C),
    )


# ----------------------------------------------------------------------------
# Pure-JAX reference (mirrors the PyTorch code, unfolded) for correctness
# ----------------------------------------------------------------------------
def reference_forward(x, audio_features, params, num_heads):
    B, N, C = x.shape
    _, M, _ = audio_features.shape
    hd = C // num_heads
    scaling = 1.0 / params["q_lora_A"].shape[0]

    def lin(t, w, b):
        return t @ w.T + b

    def lora(t, a, bm):
        # MultiTalkLoRALayer.forward: x + (x @ A.T @ B.T) * scaling
        return t + (t @ a.T @ bm.T) * scaling

    ap = lin(audio_features, params["audio_w"], params["audio_b"])
    q = lora(lin(x, params["q_w"], params["q_b"]), params["q_lora_A"], params["q_lora_B"])
    q = q.reshape(B, N, num_heads, hd).transpose(0, 2, 1, 3)
    k = lora(lin(ap, params["k_w"], params["k_b"]), params["k_lora_A"], params["k_lora_B"])
    v = lora(lin(ap, params["v_w"], params["v_b"]), params["v_lora_A"], params["v_lora_B"])
    k = k.reshape(B, M, num_heads, hd).transpose(0, 2, 1, 3)
    v = v.reshape(B, M, num_heads, hd).transpose(0, 2, 1, 3)
    attn = jnp.einsum("bhnd,bhmd->bhnm", q, k) * (hd ** -0.5)
    attn = jax.nn.softmax(attn, axis=-1)
    out = jnp.einsum("bhnm,bhmd->bhnd", attn, v)
    out = out.transpose(0, 2, 1, 3).reshape(B, N, C)
    return lin(out, params["out_w"], params["out_b"])


# ----------------------------------------------------------------------------
# Main
# ----------------------------------------------------------------------------
if __name__ == "__main__":
    # Small shapes consistent with the module: dim=32, num_heads=4 -> head_dim=8
    B, N, C = 2, 16, 32
    M, AUDIO_DIM = 8, 768
    NUM_HEADS, RANK = 4, 4

    key = jax.random.PRNGKey(0)
    ks = jax.random.split(key, 20)

    def w_init(k, shape, scale=0.02):
        return jax.random.normal(k, shape, dtype=jnp.float32) * scale

    params = {
        "q_w": w_init(ks[0], (C, C)),      "q_b": w_init(ks[1], (C,)),
        "k_w": w_init(ks[2], (C, C)),      "k_b": w_init(ks[3], (C,)),
        "v_w": w_init(ks[4], (C, C)),      "v_b": w_init(ks[5], (C,)),
        "out_w": w_init(ks[6], (C, C)),    "out_b": w_init(ks[7], (C,)),
        "audio_w": w_init(ks[8], (C, AUDIO_DIM)), "audio_b": w_init(ks[9], (C,)),
        "q_lora_A": w_init(ks[10], (RANK, C), 0.01),
        "q_lora_B": w_init(ks[11], (C, RANK), 0.01),
        "k_lora_A": w_init(ks[12], (RANK, C), 0.01),
        "k_lora_B": w_init(ks[13], (C, RANK), 0.01),
        "v_lora_A": w_init(ks[14], (RANK, C), 0.01),
        "v_lora_B": w_init(ks[15], (C, RANK), 0.01),
    }

    x = jax.random.normal(ks[16], (B, N, C), dtype=jnp.float32)
    audio_features = jax.random.normal(ks[17], (B, M, AUDIO_DIM), dtype=jnp.float32)

    out = audio_cross_attention_forward(x, audio_features, params, num_heads=NUM_HEADS)
    out = jax.block_until_ready(out)

    ref = reference_forward(x, audio_features, params, NUM_HEADS)
    # approx reciprocal + algebraically-exact weight folding introduce only
    # ~1e-5-level drift; keep a tight tolerance with a little headroom.
    np.testing.assert_allclose(np.asarray(out), np.asarray(ref), rtol=1e-4, atol=2e-4)

    assert out.shape == (B, N, C)
    print("KERNEL_OK")
</pallas_src>

<mosaic_0001>
module attributes {stable_mosaic.version = 11 : i64} {
  func.func @fused_audio_cross_attn_kernel(%arg0: i32, %arg1: i32, %arg2: memref<1x16x32xf32, #tpu.memory_space<vmem>>, %arg3: memref<1x8x768xf32, #tpu.memory_space<vmem>>, %arg4: memref<32x32xf32, #tpu.memory_space<vmem>>, %arg5: memref<1x32xf32, #tpu.memory_space<vmem>>, %arg6: memref<768x64xf32, #tpu.memory_space<vmem>>, %arg7: memref<1x64xf32, #tpu.memory_space<vmem>>, %arg8: memref<32x32xf32, #tpu.memory_space<vmem>>, %arg9: memref<1x32xf32, #tpu.memory_space<vmem>>, %arg10: memref<1x16x32xf32, #tpu.memory_space<vmem>>) attributes {dimension_semantics = [#tpu.dimension_semantics<parallel>, #tpu.dimension_semantics<parallel>], iteration_bounds = array<i64: 2, 1>, scalar_prefetch = 0 : i64, scratch_operands = 0 : i64, tpu.core_type = #tpu.core_type<tc>, window_params = [{transform_indices = @transform_0, window_bounds = array<i64: 1, 16, 32>}, {transform_indices = @transform_1, window_bounds = array<i64: 1, 8, 768>}, {pipeline_mode = #tpu.pipeline_mode<synchronous>, transform_indices = @transform_2, window_bounds = array<i64: 32, 32>}, {pipeline_mode = #tpu.pipeline_mode<synchronous>, transform_indices = @transform_3, window_bounds = array<i64: 1, 32>}, {pipeline_mode = #tpu.pipeline_mode<synchronous>, transform_indices = @transform_4, window_bounds = array<i64: 768, 64>}, {pipeline_mode = #tpu.pipeline_mode<synchronous>, transform_indices = @transform_5, window_bounds = array<i64: 1, 64>}, {pipeline_mode = #tpu.pipeline_mode<synchronous>, transform_indices = @transform_6, window_bounds = array<i64: 32, 32>}, {pipeline_mode = #tpu.pipeline_mode<synchronous>, transform_indices = @transform_7, window_bounds = array<i64: 1, 32>}, {transform_indices = @transform_8, window_bounds = array<i64: 1, 16, 32>}]} {
    %c0 = arith.constant 0 : index
    %c0_0 = arith.constant 0 : index
    %c0_1 = arith.constant 0 : index
    %0 = vector.load %arg2[%c0, %c0_0, %c0_1] : memref<1x16x32xf32, #tpu.memory_space<vmem>>, vector<1x16x32xf32>
    %1 = vector.shape_cast %0 : vector<1x16x32xf32> to vector<16x32xf32>
    %c0_2 = arith.constant 0 : index
    %c0_3 = arith.constant 0 : index
    %c0_4 = arith.constant 0 : index
    %2 = vector.load %arg3[%c0_2, %c0_3, %c0_4] : memref<1x8x768xf32, #tpu.memory_space<vmem>>, vector<1x8x768xf32>
    %3 = vector.shape_cast %2 : vector<1x8x768xf32> to vector<8x768xf32>
    %c0_5 = arith.constant 0 : index
    %c0_6 = arith.constant 0 : index
    %4 = vector.load %arg4[%c0_5, %c0_6] : memref<32x32xf32, #tpu.memory_space<vmem>>, vector<32x32xf32>
    %cst = arith.constant dense<0.000000e+00> : vector<16x32xf32>
    %5 = tpu.matmul %1, %4, %cst {dimension_numbers = #tpu.dot_dimension_numbers<[1], [0], [0], [1], [0, 0, 1, 1], [], []>} : vector<16x32xf32>, vector<32x32xf32>, vector<16x32xf32> -> vector<16x32xf32>
    %c0_7 = arith.constant 0 : index
    %c0_8 = arith.constant 0 : index
    %6 = vector.load %arg5[%c0_7, %c0_8] : memref<1x32xf32, #tpu.memory_space<vmem>>, vector<1x32xf32>
    %7 = vector.broadcast %6 : vector<1x32xf32> to vector<16x32xf32>
    %8 = arith.addf %5, %7 : vector<16x32xf32>
    %c0_9 = arith.constant 0 : index
    %c0_10 = arith.constant 0 : index
    %9 = vector.load %arg6[%c0_9, %c0_10] : memref<768x64xf32, #tpu.memory_space<vmem>>, vector<768x64xf32>
    %cst_11 = arith.constant dense<0.000000e+00> : vector<8x64xf32>
    %10 = tpu.matmul %3, %9, %cst_11 {dimension_numbers = #tpu.dot_dimension_numbers<[1], [0], [0], [1], [0, 0, 1, 1], [], []>} : vector<8x768xf32>, vector<768x64xf32>, vector<8x64xf32> -> vector<8x64xf32>
    %c0_12 = arith.constant 0 : index
    %c0_13 = arith.constant 0 : index
    %11 = vector.load %arg7[%c0_12, %c0_13] : memref<1x64xf32, #tpu.memory_space<vmem>>, vector<1x64xf32>
    %12 = vector.broadcast %11 : vector<1x64xf32> to vector<8x64xf32>
    %13 = arith.addf %10, %12 : vector<8x64xf32>
    %14 = vector.extract_strided_slice %8 {offsets = [0, 0], sizes = [16, 8], strides = [1, 1]} : vector<16x32xf32> to vector<16x8xf32>
    %15 = vector.extract_strided_slice %13 {offsets = [0, 0], sizes = [8, 8], strides = [1, 1]} : vector<8x64xf32> to vector<8x8xf32>
    %16 = vector.extract_strided_slice %13 {offsets = [0, 32], sizes = [8, 8], strides = [1, 1]} : vector<8x64xf32> to vector<8x8xf32>
    %17 = tpu.transpose %15, [1, 0] : vector<8x8xf32> -> vector<8x8xf32>
    %cst_14 = arith.constant dense<0.000000e+00> : vector<16x8xf32>
    %18 = tpu.matmul %14, %17, %cst_14 {dimension_numbers = #tpu.dot_dimension_numbers<[1], [0], [0], [1], [0, 0, 1, 1], [], []>} : vector<16x8xf32>, vector<8x8xf32>, vector<16x8xf32> -> vector<16x8xf32>
    %cst_15 = arith.constant dense<0xFF800000> : vector<16xf32>
    %19 = vector.multi_reduction <maximumf>, %18, %cst_15 [1] : vector<16x8xf32> to vector<16xf32>
    %20 = vector.shape_cast %19 : vector<16xf32> to vector<16x1xf32>
    %21 = vector.broadcast %20 : vector<16x1xf32> to vector<16x8xf32>
    %22 = arith.subf %18, %21 : vector<16x8xf32>
    %23 = math.exp %22 : vector<16x8xf32>
    %cst_16 = arith.constant dense<0.000000e+00> : vector<16xf32>
    %24 = vector.multi_reduction <add>, %23, %cst_16 [1] : vector<16x8xf32> to vector<16xf32>
    %25 = vector.shape_cast %24 : vector<16xf32> to vector<16x1xf32>
    %26 = tpu.reciprocal %25 {approx = true} : vector<16x1xf32> -> vector<16x1xf32>
    %27 = vector.broadcast %26 : vector<16x1xf32> to vector<16x8xf32>
    %28 = arith.mulf %23, %27 : vector<16x8xf32>
    %cst_17 = arith.constant dense<0.000000e+00> : vector<16x8xf32>
    %29 = tpu.matmul %28, %16, %cst_17 {dimension_numbers = #tpu.dot_dimension_numbers<[1], [0], [0], [1], [0, 0, 1, 1], [], []>} : vector<16x8xf32>, vector<8x8xf32>, vector<16x8xf32> -> vector<16x8xf32>
    %30 = vector.extract_strided_slice %8 {offsets = [0, 8], sizes = [16, 8], strides = [1, 1]} : vector<16x32xf32> to vector<16x8xf32>
    %31 = vector.extract_strided_slice %13 {offsets = [0, 8], sizes = [8, 8], strides = [1, 1]} : vector<8x64xf32> to vector<8x8xf32>
    %32 = vector.extract_strided_slice %13 {offsets = [0, 40], sizes = [8, 8], strides = [1, 1]} : vector<8x64xf32> to vector<8x8xf32>
    %33 = tpu.transpose %31, [1, 0] : vector<8x8xf32> -> vector<8x8xf32>
    %cst_18 = arith.constant dense<0.000000e+00> : vector<16x8xf32>
    %34 = tpu.matmul %30, %33, %cst_18 {dimension_numbers = #tpu.dot_dimension_numbers<[1], [0], [0], [1], [0, 0, 1, 1], [], []>} : vector<16x8xf32>, vector<8x8xf32>, vector<16x8xf32> -> vector<16x8xf32>
    %cst_19 = arith.constant dense<0xFF800000> : vector<16xf32>
    %35 = vector.multi_reduction <maximumf>, %34, %cst_19 [1] : vector<16x8xf32> to vector<16xf32>
    %36 = vector.shape_cast %35 : vector<16xf32> to vector<16x1xf32>
    %37 = vector.broadcast %36 : vector<16x1xf32> to vector<16x8xf32>
    %38 = arith.subf %34, %37 : vector<16x8xf32>
    %39 = math.exp %38 : vector<16x8xf32>
    %cst_20 = arith.constant dense<0.000000e+00> : vector<16xf32>
    %40 = vector.multi_reduction <add>, %39, %cst_20 [1] : vector<16x8xf32> to vector<16xf32>
    %41 = vector.shape_cast %40 : vector<16xf32> to vector<16x1xf32>
    %42 = tpu.reciprocal %41 {approx = true} : vector<16x1xf32> -> vector<16x1xf32>
    %43 = vector.broadcast %42 : vector<16x1xf32> to vector<16x8xf32>
    %44 = arith.mulf %39, %43 : vector<16x8xf32>
    %cst_21 = arith.constant dense<0.000000e+00> : vector<16x8xf32>
    %45 = tpu.matmul %44, %32, %cst_21 {dimension_numbers = #tpu.dot_dimension_numbers<[1], [0], [0], [1], [0, 0, 1, 1], [], []>} : vector<16x8xf32>, vector<8x8xf32>, vector<16x8xf32> -> vector<16x8xf32>
    %46 = vector.extract_strided_slice %8 {offsets = [0, 16], sizes = [16, 8], strides = [1, 1]} : vector<16x32xf32> to vector<16x8xf32>
    %47 = vector.extract_strided_slice %13 {offsets = [0, 16], sizes = [8, 8], strides = [1, 1]} : vector<8x64xf32> to vector<8x8xf32>
    %48 = vector.extract_strided_slice %13 {offsets = [0, 48], sizes = [8, 8], strides = [1, 1]} : vector<8x64xf32> to vector<8x8xf32>
    %49 = tpu.transpose %47, [1, 0] : vector<8x8xf32> -> vector<8x8xf32>
    %cst_22 = arith.constant dense<0.000000e+00> : vector<16x8xf32>
    %50 = tpu.matmul %46, %49, %cst_22 {dimension_numbers = #tpu.dot_dimension_numbers<[1], [0], [0], [1], [0, 0, 1, 1], [], []>} : vector<16x8xf32>, vector<8x8xf32>, vector<16x8xf32> -> vector<16x8xf32>
    %cst_23 = arith.constant dense<0xFF800000> : vector<16xf32>
    %51 = vector.multi_reduction <maximumf>, %50, %cst_23 [1] : vector<16x8xf32> to vector<16xf32>
    %52 = vector.shape_cast %51 : vector<16xf32> to vector<16x1xf32>
    %53 = vector.broadcast %52 : vector<16x1xf32> to vector<16x8xf32>
    %54 = arith.subf %50, %53 : vector<16x8xf32>
    %55 = math.exp %54 : vector<16x8xf32>
    %cst_24 = arith.constant dense<0.000000e+00> : vector<16xf32>
    %56 = vector.multi_reduction <add>, %55, %cst_24 [1] : vector<16x8xf32> to vector<16xf32>
    %57 = vector.shape_cast %56 : vector<16xf32> to vector<16x1xf32>
    %58 = tpu.reciprocal %57 {approx = true} : vector<16x1xf32> -> vector<16x1xf32>
    %59 = vector.broadcast %58 : vector<16x1xf32> to vector<16x8xf32>
    %60 = arith.mulf %55, %59 : vector<16x8xf32>
    %cst_25 = arith.constant dense<0.000000e+00> : vector<16x8xf32>
    %61 = tpu.matmul %60, %48, %cst_25 {dimension_numbers = #tpu.dot_dimension_numbers<[1], [0], [0], [1], [0, 0, 1, 1], [], []>} : vector<16x8xf32>, vector<8x8xf32>, vector<16x8xf32> -> vector<16x8xf32>
    %62 = vector.extract_strided_slice %8 {offsets = [0, 24], sizes = [16, 8], strides = [1, 1]} : vector<16x32xf32> to vector<16x8xf32>
    %63 = vector.extract_strided_slice %13 {offsets = [0, 24], sizes = [8, 8], strides = [1, 1]} : vector<8x64xf32> to vector<8x8xf32>
    %64 = vector.extract_strided_slice %13 {offsets = [0, 56], sizes = [8, 8], strides = [1, 1]} : vector<8x64xf32> to vector<8x8xf32>
    %65 = tpu.transpose %63, [1, 0] : vector<8x8xf32> -> vector<8x8xf32>
    %cst_26 = arith.constant dense<0.000000e+00> : vector<16x8xf32>
    %66 = tpu.matmul %62, %65, %cst_26 {dimension_numbers = #tpu.dot_dimension_numbers<[1], [0], [0], [1], [0, 0, 1, 1], [], []>} : vector<16x8xf32>, vector<8x8xf32>, vector<16x8xf32> -> vector<16x8xf32>
    %cst_27 = arith.constant dense<0xFF800000> : vector<16xf32>
    %67 = vector.multi_reduction <maximumf>, %66, %cst_27 [1] : vector<16x8xf32> to vector<16xf32>
    %68 = vector.shape_cast %67 : vector<16xf32> to vector<16x1xf32>
    %69 = vector.broadcast %68 : vector<16x1xf32> to vector<16x8xf32>
    %70 = arith.subf %66, %69 : vector<16x8xf32>
    %71 = math.exp %70 : vector<16x8xf32>
    %cst_28 = arith.constant dense<0.000000e+00> : vector<16xf32>
    %72 = vector.multi_reduction <add>, %71, %cst_28 [1] : vector<16x8xf32> to vector<16xf32>
    %73 = vector.shape_cast %72 : vector<16xf32> to vector<16x1xf32>
    %74 = tpu.reciprocal %73 {approx = true} : vector<16x1xf32> -> vector<16x1xf32>
    %75 = vector.broadcast %74 : vector<16x1xf32> to vector<16x8xf32>
    %76 = arith.mulf %71, %75 : vector<16x8xf32>
    %cst_29 = arith.constant dense<0.000000e+00> : vector<16x8xf32>
    %77 = tpu.matmul %76, %64, %cst_29 {dimension_numbers = #tpu.dot_dimension_numbers<[1], [0], [0], [1], [0, 0, 1, 1], [], []>} : vector<16x8xf32>, vector<8x8xf32>, vector<16x8xf32> -> vector<16x8xf32>
    %78 = tpu.concatenate %29, %45, %61, %77 in 1 : vector<16x8xf32>, vector<16x8xf32>, vector<16x8xf32>, vector<16x8xf32> -> vector<16x32xf32>
    %c0_30 = arith.constant 0 : index
    %c0_31 = arith.constant 0 : index
    %79 = vector.load %arg8[%c0_30, %c0_31] : memref<32x32xf32, #tpu.memory_space<vmem>>, vector<32x32xf32>
    %cst_32 = arith.constant dense<0.000000e+00> : vector<16x32xf32>
    %80 = tpu.matmul %78, %79, %cst_32 {dimension_numbers = #tpu.dot_dimension_numbers<[1], [0], [0], [1], [0, 0, 1, 1], [], []>} : vector<16x32xf32>, vector<32x32xf32>, vector<16x32xf32> -> vector<16x32xf32>
    %c0_33 = arith.constant 0 : index
    %c0_34 = arith.constant 0 : index
    %81 = vector.load %arg9[%c0_33, %c0_34] : memref<1x32xf32, #tpu.memory_space<vmem>>, vector<1x32xf32>
    %82 = vector.broadcast %81 : vector<1x32xf32> to vector<16x32xf32>
    %83 = arith.addf %80, %82 : vector<16x32xf32>
    %c0_35 = arith.constant 0 : index
    %c0_36 = arith.constant 0 : index
    %c0_37 = arith.constant 0 : index
    %84 = vector.load %arg10[%c0_35, %c0_36, %c0_37] : memref<1x16x32xf32, #tpu.memory_space<vmem>>, vector<1x16x32xf32>
    %85 = vector.shape_cast %84 : vector<1x16x32xf32> to vector<16x32xf32>
    %86 = vector.shape_cast %83 : vector<16x32xf32> to vector<1x16x32xf32>
    tpu.vector_store %arg10[%c0_35, %c0_36, %c0_37], %86 {strides = array<i32>} : memref<1x16x32xf32, #tpu.memory_space<vmem>>, vector<1x16x32xf32>,
    return
  }
  func.func @transform_0(%arg0: i32, %arg1: i32) -> (i32, i32, i32) {
    %c0_i32 = arith.constant 0 : i32
    %c0_i32_0 = arith.constant 0 : i32
    return %arg0, %arg1, %c0_i32 : i32, i32, i32
  }
  func.func @transform_1(%arg0: i32, %arg1: i32) -> (i32, i32, i32) {
    %c0_i32 = arith.constant 0 : i32
    %c0_i32_0 = arith.constant 0 : i32
    %c0_i32_1 = arith.constant 0 : i32
    return %arg0, %c0_i32, %c0_i32_0 : i32, i32, i32
  }
  func.func @transform_2(%arg0: i32, %arg1: i32) -> (i32, i32) {
    %c0_i32 = arith.constant 0 : i32
    %c0_i32_0 = arith.constant 0 : i32
    %c0_i32_1 = arith.constant 0 : i32
    return %c0_i32, %c0_i32_0 : i32, i32
  }
  func.func @transform_3(%arg0: i32, %arg1: i32) -> (i32, i32) {
    %c0_i32 = arith.constant 0 : i32
    %c0_i32_0 = arith.constant 0 : i32
    %c0_i32_1 = arith.constant 0 : i32
    return %c0_i32, %c0_i32_0 : i32, i32
  }
  func.func @transform_4(%arg0: i32, %arg1: i32) -> (i32, i32) {
    %c0_i32 = arith.constant 0 : i32
    %c0_i32_0 = arith.constant 0 : i32
    %c0_i32_1 = arith.constant 0 : i32
    return %c0_i32, %c0_i32_0 : i32, i32
  }
  func.func @transform_5(%arg0: i32, %arg1: i32) -> (i32, i32) {
    %c0_i32 = arith.constant 0 : i32
    %c0_i32_0 = arith.constant 0 : i32
    %c0_i32_1 = arith.constant 0 : i32
    return %c0_i32, %c0_i32_0 : i32, i32
  }
  func.func @transform_6(%arg0: i32, %arg1: i32) -> (i32, i32) {
    %c0_i32 = arith.constant 0 : i32
    %c0_i32_0 = arith.constant 0 : i32
    %c0_i32_1 = arith.constant 0 : i32
    return %c0_i32, %c0_i32_0 : i32, i32
  }
  func.func @transform_7(%arg0: i32, %arg1: i32) -> (i32, i32) {
    %c0_i32 = arith.constant 0 : i32
    %c0_i32_0 = arith.constant 0 : i32
    %c0_i32_1 = arith.constant 0 : i32
    return %c0_i32, %c0_i32_0 : i32, i32
  }
  func.func @transform_8(%arg0: i32, %arg1: i32) -> (i32, i32, i32) {
    %c0_i32 = arith.constant 0 : i32
    %c0_i32_0 = arith.constant 0 : i32
    return %arg0, %arg1, %c0_i32 : i32, i32, i32
  }
}

</mosaic_0001>

<bundles_post_ra>
// kernel: audio_cross_attention_forward.1
= control target key start
LH: loop header
LB: loop body
LE: loop exit
PB: predicated region body
PF: predicated region fallthrough
CT: control target
= control target key end

     0   :  { %s2900_s0 = inlined_call_operand.vmem [shape: f32[2,16,32], index: 0, kind: input, shape index: {}]   ;;  %s2901_s1 = inlined_call_operand.vmem [shape: f32[2,8,768], index: 1, kind: input, shape index: {}]   ;;  %s2902_s2 = inlined_call_operand.vmem [shape: f32[32,32], index: 2, kind: input, shape index: {}]   ;;  %s2903_s3 = inlined_call_operand.vmem [shape: f32[1,32], index: 3, kind: input, shape index: {}]   ;;  %s2904_s4 = inlined_call_operand.vmem [shape: f32[768,64], index: 4, kind: input, shape index: {}]   ;;  %s2905_s5 = inlined_call_operand.vmem [shape: f32[1,64], index: 5, kind: input, shape index: {}]   ;;  %s2906_s6 = inlined_call_operand.vmem [shape: f32[32,32], index: 6, kind: input, shape index: {}]   ;;  %s2907_s7 = inlined_call_operand.vmem [shape: f32[1,32], index: 7, kind: input, shape index: {}]   ;;  %s2908_s8 = inlined_call_operand.hbm [shape: f32[2,16,32], index: 8, kind: output, shape index: {}]  }
   0x1   :  { %2909 = sst [smem:[#allocation5_spill]] %s2902_s2 }
   0x2   :  { %13 = vsyncpa [#allocation3], 0 }
   0x3   :  { %15 = vsyncpa [#allocation3 + $0x1], 0  ;;  %s2366_s27 = smov 0   ;;  %s2368_s28 = smov 0  }
   0x4   :  { %s2370_s29 = smov 0   ;;  %s2372_s30 = smov 0  }
   0x5   :  { %s2374_s9 = smov 0   ;;  %s2376_s10 = smov 0  }
   0x6 LB: > { %s1772_s11 = sadd.s32 4294967295, %s2307_s10   ;;  %s1773_s12 = sadd.s32 4294967294, %s2307_s10   ;;  %s2307_s10 = sphi %s2376_s10, %s21_s10   ;;  %s2303_s9 = sphi %s2374_s9, %s2917_s9   ;;  %s2299_s30 = sphi %s2372_s30, %s2916_s30   ;;  %s2295_s29 = sphi %s2370_s29, %s2915_s29   ;;  %s2291_s28 = sphi %s2368_s28, %s2914_s28   ;;  %s2287_s27 = sphi %s2366_s27, %s2913_s27  }
   0x7   : > { %s33_s13 = sadd.s32 1, %s2303_s9  ;;  %s222_s14 = sadd.s32 1, %s2295_s29 }
   0x8   : > { %p35_p0 = scmp.ge.s32.totalorder %s33_s13, 2  ;;  %p232_p1 = scmp.ne.s32.totalorder %s2295_s29, %s2291_s28 }
   0x9   : > { %p233_p2 = scmp.eq.s32.totalorder %s1772_s11, 1  ;;  %p238_p3 = scmp.ne.s32.totalorder %s2291_s28, %s2287_s27 }
   0xa   : > { %s2919_s13 = smov (%p35_p0, %s33_s13), 0  ;;  %p239_p5 = scmp.eq.s32.totalorder %s1773_s12, 1 }
   0xb   : > { %p2406_p4 = por %p233_p2, %p232_p1  ;;  %s217_s16 = ssub.s32 %s2303_s9, %s2919_s13 }
   0xc   : > { %p1776_p6 = scmp.ge.s32.totalorder %s2307_s10, 1  ;;  %p220_p7 = scmp.eq.s32.totalorder %s217_s16, 0 }
   0xd   : > { %p2413_p8 = por %p239_p5, %p238_p3  ;;  %p296_p9 = scmp.lt.s32.totalorder %s2307_s10, 3 }
   0xe   : > { %s2419_s18 = scalar_select %p220_p7, %s2295_s29, %s222_s14  }
   0xf   : > { %p297_p10 = pnand %p1776_p6, %p296_p9 }
  0x10   : > { %s2912_s2 = sld [smem:[#allocation5_spill]] (!%p297_p10)  ;;  %v472_v2 = vld [vmem:[%s2904_s4 + $0x80] sm:$0xff] (!%p297_p10)  ;;  %p340_p11 = scmp.lt.s32.totalorder (!%p297_p10), %s2299_s30, 1  ;;  %v473_v4 = vld [vmem:[%s2904_s4 + $0x88] sm:$0xff] (!%p297_p10)  ;;  %v474_v11 = vld [vmem:[%s2904_s4 + $0x90] sm:$0xff] (!%p297_p10)  ;;  %vm374_vm0 = vcmask (!%p297_p10), 261120  }
  0x11   : > { %300 = sbr.rel (%p297_p10) target bundleno = 3005 (0xbbd), region = 52  ;;  %v456_v5 = vld [vmem:[%s2904_s4] sm:$0xff] (!%p297_p10)  ;;  %v457_v6 = vld [vmem:[%s2904_s4 + $0x8] sm:$0xff] (!%p297_p10)  ;;  %v2026_v7 = vpack.c.bf16 (!%p297_p10), %v473_v4, %v472_v2  ;;  %v475_v13 = vld [vmem:[%s2904_s4 + $0x98] sm:$0xff] (!%p297_p10)  ;;  %vm769_vm1 = vcmask (!%p297_p10), 64512   ;;  %s2311_s14 = smov (!%p297_p10), 112  }
  0x12   : > { %v2028_v8 = vpack.c.bf16 (!%p297_p10), %v457_v6, %v456_v5  ;;  %v458_v14 = vld [vmem:[%s2904_s4 + $0x10] sm:$0xff] (!%p297_p10)  ;;  %v459_v15 = vld [vmem:[%s2904_s4 + $0x18] sm:$0xff] (!%p297_p10)  ;;  %v2030_v16 = vpack.c.bf16 (!%p297_p10), %v475_v13, %v474_v11  ;;  %v476_v17 = vld [vmem:[%s2904_s4 + $0xa0] sm:$0xff] (!%p297_p10)  ;;  %s2313_s19 = smov (!%p297_p10), 104   ;;  %s2314_s21 = smov (!%p297_p10), 80   ;;  %vm1565_vm2 = vcmask (!%p297_p10), 130048  }
  0x13   : > { %2027 = vmatprep.subr.bf16.mxu1 (!%p297_p10), %v2026_v7  ;;  %v477_v18 = vld [vmem:[%s2904_s4 + $0xa8] sm:$0xff] (!%p297_p10)  ;;  %v504_v19 = vld [vmem:[%s2904_s4 + $0x180] sm:$0xff] (!%p297_p10)  ;;  %v2032_v20 = vpack.c.bf16 (!%p297_p10), %v459_v15, %v458_v14  ;;  %v478_v29 = vld [vmem:[%s2904_s4 + $0xb0] sm:$0xff] (!%p297_p10)  ;;  %s2315_s22 = smov (!%p297_p10), 8   ;;  %s2316_s23 = smov (!%p297_p10), 16   ;;  %vm1568_vm3 = vcmask (!%p297_p10), 195584  }
  0x14   : > { %2029 = vmatpush3.bf16.msra.mxu1 (!%p297_p10), %v2028_v8  ;;  %v505_v21 = vld [vmem:[%s2904_s4 + $0x188] sm:$0xff] (!%p297_p10)  ;;  %v460_v22 = vld [vmem:[%s2904_s4 + $0x20] sm:$0xff] (!%p297_p10)  ;;  %v2034_v24 = vpack.c.bf16 (!%p297_p10), %v477_v18, %v476_v17  ;;  %v479_v30 = vld [vmem:[%s2904_s4 + $0xb8] sm:$0xff] (!%p297_p10)  ;;  %s2317_s24 = smov (!%p297_p10), 72  }
  0x15   : > { %2031 = vmatprep.subr.bf16.mxu1 (!%p297_p10), %v2030_v16  ;;  %v2058_v25 = vpack.c.bf16 (!%p297_p10), %v505_v21, %v504_v19  ;;  %v461_v26 = vld [vmem:[%s2904_s4 + $0x28] sm:$0xff] (!%p297_p10)  ;;  %v488_v27 = vld [vmem:[%s2904_s4 + $0x100] sm:$0xff] (!%p297_p10)  ;;  %v506_v33 = vld [vmem:[%s2904_s4 + $0x190] sm:$0xff] (!%p297_p10)  ;;  %v2038_v39 = vpack.c.bf16 (!%p297_p10), %v479_v30, %v478_v29 }
  0x16   : > { %v363_v0 = vld [vmem:[%s2912_s2] sm:$0xff] (!%p297_p10)  ;;  %v364_v1 = vld [vmem:[%s2912_s2 + $0x8] sm:$0xff] (!%p297_p10)  ;;  %v365_v9 = vld [vmem:[%s2912_s2 + $0x10] sm:$0xff] (!%p297_p10)  ;;  %v2036_v35 = vpack.c.bf16 (!%p297_p10), %v461_v26, %v460_v22 }
  0x17   : > { %v2018_v3 = vpack.c.bf16 (!%p297_p10), %v364_v1, %v363_v0  ;;  %v366_v10 = vld [vmem:[%s2912_s2 + $0x18] sm:$0xff] (!%p297_p10)  ;;  %v489_v28 = vld [vmem:[%s2904_s4 + $0x108] sm:$0xff] (!%p297_p10)  ;;  %v490_v37 = vld [vmem:[%s2904_s4 + $0x110] sm:$0xff] (!%p297_p10) }
  0x18   : > { %s2450_s25 = scalar_select %p340_p11, %s2299_s30, 1  ;;  %v2022_v12 = vpack.c.bf16 %v366_v10, %v365_v9  ;;  %v2060_v32 = vpack.c.bf16 %v489_v28, %v488_v27  ;;  %v507_v34 = vld [vmem:[%s2904_s4 + $0x198] sm:$0xff]  ;;  %2033 = vmatpush3.bf16.msra.mxu1 %v2032_v20  ;;  %v462_v40 = vld [vmem:[%s2904_s4 + $0x30] sm:$0xff]  ;;  %v508_v42 = vld [vmem:[%s2904_s4 + $0x1a0] sm:$0xff] }
  0x19   : > { %2019 = vmatprep.subr.bf16.mxu0 %v2018_v3  ;;  %v2062_v36 = vpack.c.bf16 %v507_v34, %v506_v33  ;;  %v491_v38 = vld [vmem:[%s2904_s4 + $0x118] sm:$0xff]  ;;  %2035 = vmatprep.subr.bf16.mxu1 %v2034_v24  ;;  %v480_v43 = vld [vmem:[%s2904_s4 + $0xc0] sm:$0xff]  ;;  %v481_v44 = vld [vmem:[%s2904_s4 + $0xc8] sm:$0xff] }
  0x1a   : > { %2021 = vmatpush3.bf16.msra.mxu0 %v2018_v3  ;;  %s1813_s20 = sshll.u32 %s2450_s25, 4  ;;  %v463_v41 = vld [vmem:[%s2904_s4 + $0x38] sm:$0xff]  ;;  %v509_v45 = vld [vmem:[%s2904_s4 + $0x1a8] sm:$0xff]  ;;  %v2064_v46 = vpack.c.bf16 %v491_v38, %v490_v37  ;;  %s2130_s12 = smul.u32 48, %s2450_s25  ;;  %v464_v49 = vld [vmem:[%s2904_s4 + $0x40] sm:$0xff]  ;;  %v2042_v52 = vpack.c.bf16 %v481_v44, %v480_v43 }
  0x1b   : > { %2023 = vmatprep.subr.bf16.mxu0 %v2022_v12  ;;  %s347_s16 = scalar_lea.vmem %s2900_s0, %s1813_s20  ;;  %v2040_v47 = vpack.c.bf16 %v463_v41, %v462_v40  ;;  %v2066_v48 = vpack.c.bf16 %v509_v45, %v508_v42  ;;  %v492_v50 = vld [vmem:[%s2904_s4 + $0x120] sm:$0xff]  ;;  %v493_v51 = vld [vmem:[%s2904_s4 + $0x128] sm:$0xff]  ;;  %v510_v54 = vld [vmem:[%s2904_s4 + $0x1b0] sm:$0xff]  ;;  %s1814_s20 = sshll.u32 %s2299_s30, 8 }
  0x1c   : > { %v355_v23 = vld [vmem:[%s347_s16] sm:$0xff]  ;;  %v356_v31 = vld [vmem:[%s347_s16 + $0x8] sm:$0xff]  ;;  %2037 = vmatpush3.bf16.msra.mxu1 %v2036_v35  ;;  %v511_v55 = vld [vmem:[%s2904_s4 + $0x1b8] sm:$0xff]  ;;  %v2068_v58 = vpack.c.bf16 %v493_v51, %v492_v50  ;;  %s2555_s26 = scalar_lea.vmem %s2901_s1, %s2130_s12  ;;  %s2310_s16 = smov 96  }
  0x1d   : > { %1964 = vmatprep.mubr.msk.f32.mxu0 %vm374_vm0, %v355_v23  ;;  %2039 = vmatprep.subr.bf16.mxu1 %v2038_v39  ;;  %v465_v53 = vld [vmem:[%s2904_s4 + $0x48] sm:$0xff]  ;;  %v482_v56 = vld [vmem:[%s2904_s4 + $0xd0] sm:$0xff]  ;;  %v483_v57 = vld [vmem:[%s2904_s4 + $0xd8] sm:$0xff]  ;;  %v2070_v60 = vpack.c.bf16 %v511_v55, %v510_v54  ;;  %s2312_s12 = smov 88  }
  0x1e   : > { %2025 = vmatpush3.bf16.msra.mxu0 %v2022_v12  ;;  %v2044_v59 = vpack.c.bf16 %v465_v53, %v464_v49  ;;  %v466_v61 = vld [vmem:[%s2904_s4 + $0x50] sm:$0xff]  ;;  %v495_v63 = vld [vmem:[%s2904_s4 + $0x138] sm:$0xff]  ;;  %v2046_v0 = vpack.c.bf16 %v483_v57, %v482_v56  ;;  %v512_v2 = vld [vmem:[%s2904_s4 + $0x1c0] sm:$0xff] }
  0x1f   : > { %2059 = vmatprep.subr.bf16.mxu0 %v2058_v25  ;;  %v494_v62 = vld [vmem:[%s2904_s4 + $0x130] sm:$0xff]  ;;  %v467_v1 = vld [vmem:[%s2904_s4 + $0x58] sm:$0xff]  ;;  %v513_v3 = vld [vmem:[%s2904_s4 + $0x1c8] sm:$0xff] }
  0x20   : > { %2041 = vmatpush3.bf16.msra.mxu1 %v2040_v47  ;;  %v484_v4 = vld [vmem:[%s2904_s4 + $0xe0] sm:$0xff]  ;;  %v485_v5 = vld [vmem:[%s2904_s4 + $0xe8] sm:$0xff]  ;;  %v2072_v6 = vpack.c.bf16 %v495_v63, %v494_v62  ;;  %v2048_v8 = vpack.c.bf16 %v467_v1, %v466_v61  ;;  %v2074_v9 = vpack.c.bf16 %v513_v3, %v512_v2  ;;  %v514_v15 = vld [vmem:[%s2904_s4 + $0x1d0] sm:$0xff] }
  0x21   : > { %1965 = vmatmul.mubr.msk.f32.vlgmr.msra.gmra.mrb[0].mxu0 %vm374_vm0, %v356_v31  ;;  %2043 = vmatprep.subr.bf16.mxu1 %v2042_v52  ;;  %v358_v7 = vld [vmem:[%s2555_s26 + $0x8] sm:$0xff]  ;;  %v468_v10 = vld [vmem:[%s2904_s4 + $0x60] sm:$0xff]  ;;  %v2050_v13 = vpack.c.bf16 %v485_v5, %v484_v4  ;;  %v515_v16 = vld [vmem:[%s2904_s4 + $0x1d8] sm:$0xff] }
  0x22   : > { %2061 = vmatpush3.bf16.msra.mxu0 %v2060_v32  ;;  %v496_v11 = vld [vmem:[%s2904_s4 + $0x140] sm:$0xff]  ;;  %v497_v12 = vld [vmem:[%s2904_s4 + $0x148] sm:$0xff]  ;;  %623 = vmatprep.mubr.f32.mxu1 %v358_v7  ;;  %v486_v17 = vld [vmem:[%s2904_s4 + $0xf0] sm:$0xff]  ;;  %v2078_v22 = vpack.c.bf16 %v515_v16, %v514_v15 }
  0x23   : > { %2063 = vmatprep.subr.bf16.mxu0 %v2062_v36  ;;  %v469_v14 = vld [vmem:[%s2904_s4 + $0x68] sm:$0xff]  ;;  %v487_v18 = vld [vmem:[%s2904_s4 + $0xf8] sm:$0xff]  ;;  %v2076_v19 = vpack.c.bf16 %v497_v12, %v496_v11  ;;  %v470_v20 = vld [vmem:[%s2904_s4 + $0x70] sm:$0xff] }
  0x24   : > { %2045 = vmatpush3.bf16.msra.mxu1 %v2044_v59  ;;  %v2052_v21 = vpack.c.bf16 %v469_v14, %v468_v10  ;;  %v471_v23 = vld [vmem:[%s2904_s4 + $0x78] sm:$0xff]  ;;  %v498_v24 = vld [vmem:[%s2904_s4 + $0x150] sm:$0xff]  ;;  %v2054_v26 = vpack.c.bf16 %v487_v18, %v486_v17  ;;  %v516_v27 = vld [vmem:[%s2904_s4 + $0x1e0] sm:$0xff] }
  0x25   : > { %2047 = vmatprep.subr.bf16.mxu1 %v2046_v0  ;;  %v499_v25 = vld [vmem:[%s2904_s4 + $0x158] sm:$0xff]  ;;  %v517_v28 = vld [vmem:[%s2904_s4 + $0x1e8] sm:$0xff]  ;;  %v536_v30 = vld [vmem:[%s2904_s4 + $0x280] sm:$0xff]  ;;  %v2056_v33 = vpack.c.bf16 %v471_v23, %v470_v20 }
  0x26   : > { %2065 = vmatpush3.bf16.msra.mxu0 %v2064_v46  ;;  %v360_v29 = vld [vmem:[%s2555_s26 + $0x18] sm:$0xff]  ;;  %v537_v31 = vld [vmem:[%s2904_s4 + $0x288] sm:$0xff]  ;;  %v2080_v32 = vpack.c.bf16 %v499_v25, %v498_v24  ;;  %v2082_v34 = vpack.c.bf16 %v517_v28, %v516_v27  ;;  %v500_v35 = vld [vmem:[%s2904_s4 + $0x160] sm:$0xff] }
  0x27   : > { %2067 = vmatprep.subr.bf16.mxu0 %v2066_v48  ;;  %693 = vmatprep.mubr.f32.mxu0 %v360_v29  ;;  %v501_v36 = vld [vmem:[%s2904_s4 + $0x168] sm:$0xff]  ;;  %v520_v37 = vld [vmem:[%s2904_s4 + $0x200] sm:$0xff]  ;;  %v2090_v38 = vpack.c.bf16 %v537_v31, %v536_v30  ;;  %v518_v40 = vld [vmem:[%s2904_s4 + $0x1f0] sm:$0xff] }
  0x28   : > { %2049 = vmatpush3.bf16.msra.mxu1 %v2048_v8  ;;  %v521_v39 = vld [vmem:[%s2904_s4 + $0x208] sm:$0xff]  ;;  %v519_v41 = vld [vmem:[%s2904_s4 + $0x1f8] sm:$0xff]  ;;  %v538_v42 = vld [vmem:[%s2904_s4 + $0x290] sm:$0xff]  ;;  %v2084_v44 = vpack.c.bf16 %v501_v36, %v500_v35 }
  0x29   : > { %2051 = vmatprep.subr.bf16.mxu1 %v2050_v13  ;;  %v539_v43 = vld [vmem:[%s2904_s4 + $0x298] sm:$0xff]  ;;  %v357_v45 = vld [vmem:[%s2555_s26] sm:$0xff]  ;;  %v2092_v46 = vpack.c.bf16 %v521_v39, %v520_v37  ;;  %v2086_v47 = vpack.c.bf16 %v519_v41, %v518_v40  ;;  %v502_v48 = vld [vmem:[%s2904_s4 + $0x170] sm:$0xff] }
  0x2a   : > { %2069 = vmatpush3.bf16.msra.mxu0 %v2068_v58  ;;  %v503_v49 = vld [vmem:[%s2904_s4 + $0x178] sm:$0xff]  ;;  %v2094_v50 = vpack.c.bf16 %v539_v43, %v538_v42  ;;  %v522_v51 = vld [vmem:[%s2904_s4 + $0x210] sm:$0xff]  ;;  %v540_v53 = vld [vmem:[%s2904_s4 + $0x2a0] sm:$0xff] }
  0x2b   : > { %2071 = vmatprep.subr.bf16.mxu0 %v2070_v60  ;;  %v523_v52 = vld [vmem:[%s2904_s4 + $0x218] sm:$0xff]  ;;  %v541_v54 = vld [vmem:[%s2904_s4 + $0x2a8] sm:$0xff]  ;;  %v2088_v56 = vpack.c.bf16 %v503_v49, %v502_v48  ;;  %v524_v59 = vld [vmem:[%s2904_s4 + $0x220] sm:$0xff] }
  0x2c   : > { %2053 = vmatpush3.bf16.msra.mxu1 %v2052_v21  ;;  %v362_v55 = vld [vmem:[%s2555_s26 + $0x28] sm:$0xff]  ;;  %v2096_v57 = vpack.c.bf16 %v523_v52, %v522_v51  ;;  %v2098_v58 = vpack.c.bf16 %v541_v54, %v540_v53  ;;  %v542_v61 = vld [vmem:[%s2904_s4 + $0x2b0] sm:$0xff]  ;;  %v543_v62 = vld [vmem:[%s2904_s4 + $0x2b8] sm:$0xff] }
  0x2d   : > { %2055 = vmatprep.subr.bf16.mxu1 %v2054_v26  ;;  %v525_v60 = vld [vmem:[%s2904_s4 + $0x228] sm:$0xff]  ;;  %v359_v63 = vld [vmem:[%s2555_s26 + $0x10] sm:$0xff]  ;;  %v2102_v1 = vpack.c.bf16 %v543_v62, %v542_v61  ;;  %v527_v3 = vld [vmem:[%s2904_s4 + $0x238] sm:$0xff] }
  0x2e   : > { %2073 = vmatpush3.bf16.msra.mxu0 %v2072_v6  ;;  %v2100_v0 = vpack.c.bf16 %v525_v60, %v524_v59  ;;  %v526_v2 = vld [vmem:[%s2904_s4 + $0x230] sm:$0xff]  ;;  %v544_v4 = vld [vmem:[%s2904_s4 + $0x2c0] sm:$0xff]  ;;  %v545_v5 = vld [vmem:[%s2904_s4 + $0x2c8] sm:$0xff] }
  0x2f   : > { %2075 = vmatprep.subr.bf16.mxu0 %v2074_v9  ;;  %v2104_v6 = vpack.c.bf16 %v527_v3, %v526_v2  ;;  %v2106_v7 = vpack.c.bf16 %v545_v5, %v544_v4  ;;  %v528_v8 = vld [vmem:[%s2904_s4 + $0x240] sm:$0xff]  ;;  %v529_v9 = vld [vmem:[%s2904_s4 + $0x248] sm:$0xff]  ;;  %v546_v10 = vld [vmem:[%s2904_s4 + $0x2d0] sm:$0xff] }
  0x30   : > { %2057 = vmatpush3.bf16.msra.mxu1 %v2056_v33  ;;  %v547_v11 = vld [vmem:[%s2904_s4 + $0x2d8] sm:$0xff]  ;;  %v2108_v12 = vpack.c.bf16 %v529_v9, %v528_v8  ;;  %v530_v14 = vld [vmem:[%s2904_s4 + $0x250] sm:$0xff]  ;;  %v548_v16 = vld [vmem:[%s2904_s4 + $0x2e0] sm:$0xff] }
  0x31   : > { %2091 = vmatprep.subr.bf16.mxu1 %v2090_v38  ;;  %v2110_v13 = vpack.c.bf16 %v547_v11, %v546_v10  ;;  %v531_v15 = vld [vmem:[%s2904_s4 + $0x258] sm:$0xff]  ;;  %v549_v17 = vld [vmem:[%s2904_s4 + $0x2e8] sm:$0xff]  ;;  %v532_v20 = vld [vmem:[%s2904_s4 + $0x260] sm:$0xff] }
  0x32   : > { %2077 = vmatpush3.bf16.msra.mxu0 %v2076_v19  ;;  %v2112_v18 = vpack.c.bf16 %v531_v15, %v530_v14  ;;  %v2114_v19 = vpack.c.bf16 %v549_v17, %v548_v16  ;;  %v533_v21 = vld [vmem:[%s2904_s4 + $0x268] sm:$0xff]  ;;  %v551_v23 = vld [vmem:[%s2904_s4 + $0x2f8] sm:$0xff]  ;;  %v534_v26 = vld [vmem:[%s2904_s4 + $0x270] sm:$0xff] }
  0x33   : > { %2079 = vmatprep.subr.bf16.mxu0 %v2078_v22  ;;  %624 = vmatmul.mubr.f32.vlgmr.msra.gmra.mrb[0].mxu1 %v357_v45  ;;  %v550_v22 = vld [vmem:[%s2904_s4 + $0x2f0] sm:$0xff]  ;;  %v2116_v24 = vpack.c.bf16 %v533_v21, %v532_v20  ;;  %v535_v27 = vld [vmem:[%s2904_s4 + $0x278] sm:$0xff]  ;;  %v361_v29 = vld [vmem:[%s2555_s26 + $0x20] sm:$0xff]  ;;  %s2309_s26 = smov 120  }
  0x34   : > { %2093 = vmatpush3.bf16.msra.mxu1 %v2092_v46  ;;  %763 = vmatprep.mubr.f32.mxu1 %v362_v55  ;;  %v2118_v25 = vpack.c.bf16 %v551_v23, %v550_v22  ;;  %v2120_v28 = vpack.c.bf16 %v535_v27, %v534_v26  ;;  %v1781_v30 = vld [vmem:[%s2903_s3] ss:$0 sm:$0xff] }
  0x35   : > { %2095 = vmatprep.subr.bf16.mxu1 %v2094_v50  ;;  %v1784_v37 = vld [vmem:[%s2905_s5] ss:$0 sm:$0xff] }
  0x36   : > { %2081 = vmatpush3.bf16.msra.mxu0 %v2080_v32 }
  0x37   : > { %2083 = vmatprep.subr.bf16.mxu0 %v2082_v34 }
  0x38   : > { %2097 = vmatpush3.bf16.msra.mxu1 %v2096_v57 }
  0x39   : > { %2099 = vmatprep.subr.bf16.mxu1 %v2098_v58 }
  0x3a   : > { %2085 = vmatpush3.bf16.msra.mxu0 %v2084_v44 }
  0x3b   : > { %2087 = vmatprep.subr.bf16.mxu0 %v2086_v47 }
  0x3c   : > { %2101 = vmatpush3.bf16.msra.mxu1 %v2100_v0 }
  0x3d   : > { %2103 = vmatprep.subr.bf16.mxu1 %v2102_v1 }
  0x3e   : > { %2089 = vmatpush3.bf16.msra.mxu0 %v2088_v56 }
  0x40   : > { %2105 = vmatpush3.bf16.msra.mxu1 %v2104_v6 }
  0x41   : > { %694 = vmatmul.mubr.f32.vlgmr.msra.gmra.mrb[2].mxu0 %v359_v63  ;;  %2107 = vmatprep.subr.bf16.mxu1 %v2106_v7 }
  0x44   : > { %2109 = vmatpush3.bf16.msra.mxu1 %v2108_v12 }
  0x45   : > { %2111 = vmatprep.subr.bf16.mxu1 %v2110_v13 }
  0x48   : > { %2113 = vmatpush3.bf16.msra.mxu1 %v2112_v18 }
  0x49   : > { %2115 = vmatprep.subr.bf16.mxu1 %v2114_v19 }
  0x4c   : > { %2117 = vmatpush3.bf16.msra.mxu1 %v2116_v24 }
  0x4d   : > { %2119 = vmatprep.subr.bf16.mxu1 %v2118_v25 }
  0x50   : > { %2121 = vmatpush3.bf16.msra.mxu1 %v2120_v28 }
  0x53   : > { %764 = vmatmul.mubr.f32.vlgmr.msra.gmra.mrb[2].mxu1 %v361_v29 }
  0xf4   : > { %v1966_v31 = vpop.f32.mrb[0].mxu0 }
  0xf5   : > { %v447_v32 = vpop.f32.mrb[1].mxu0  ;;  %v2761_v47 = vadd.f32 %v1966_v31, %v1781_v30 }
  0xf6   : > { %v2746_v33 = vadd.f32 %v1781_v30, %v447_v32 }
  0xf8   : > { %1969 = vmatprep.mubr.msk.f32.mxu1 %vm769_vm1, %v2746_v33 }
 0x106   : > { %v1853_v34 = vpop.f32.mrb[0].mxu1 }
 0x107   : > { %v1854_v35 = vpop.f32.mrb[1].mxu1 }
 0x108   : > { %v1855_v36 = vadd.f32 %v1854_v35, %v1853_v34 }
 0x10a   : > { %v626_v40 = vadd.f32 %v1855_v36, %v1784_v37 }
 0x114   : > { %v1888_v38 = vpop.f32.mrb[2].mxu0 }
 0x115   : > { %v1889_v39 = vpop.f32.mrb[3].mxu0 }
 0x116   : > { %v1890_v41 = vadd.f32 %v1889_v39, %v1888_v38 }
 0x118   : > { %v696_v42 = vadd.f32 %v1890_v41, %v626_v40 }
 0x126   : > { %v1923_v43 = vpop.f32.mrb[2].mxu1 }
 0x127   : > { %v1924_v44 = vpop.f32.mrb[3].mxu1 }
 0x128   : > { %v1925_v45 = vadd.f32 %v1924_v44, %v1923_v43 }
 0x12a   : > { %v2753_v46 = vadd.f32 %v1925_v45, %v696_v42 }
 0x12c   : > { %964 = vrot.lane.b32.xlu1 %v2753_v46, %s2309_s26  ;;  %1967 = vmatprep.subr.msk.mxu1 %vm769_vm1, %v2753_v46 }
 0x12d   : > { %1968 = vmatpush3.xpose.msk.msra.mxu1 %vm769_vm1, %v2753_v46 }
 0x130   : > { %960 = vrot.lane.b32.xlu1 %v2746_v33, %s2309_s26  ;;  %1970 = vmatmul.mubr.msk.f32.vlgmr.msra.gmra.mrb[4].mxu1 %vm769_vm1, %v2761_v47 }
 0x19e   : > { %v965_v59 = vpop.permute.xlu1 %964 }
 0x1a2   : > { %v961_v0 = vpop.permute.xlu1 %960 }
 0x203   : > { %v1971_v48 = vpop.f32.mrb[4].mxu1 }
 0x204   : > { %v845_v49 = vpop.f32.mrb[5].mxu1  ;;  %v857_v51 = vsel %vm769_vm1, %v1971_v48, -inf }
 0x205   : > { %v854_v50 = vsel %vm769_vm1, %v845_v49, -inf }
 0x206   : > { %855 = vmax.xlane.f32.xlu0 %v854_v50 }
 0x20a   : > { %858 = vmax.xlane.f32.xlu0 %v857_v51 }
 0x220   : > { %876 = vrot.lane.b32.xlu0 %v2753_v46, %s2310_s16 }
 0x293   : > { %v856_v52 = vpop.xlane.xlu0 %855 }
 0x294   : > { %v860_v53 = vsub.f32 %v845_v49, %v856_v52 }
 0x296   : > { %v862_v56 = vmul.f32 1.442695, %v860_v53 }
 0x297   : > { %v859_v54 = vpop.xlane.xlu0 %858 }
 0x298   : > { %v861_v55 = vsub.f32 %v1971_v48, %v859_v54 }
 0x29a   : > { %v864_v57 = vmul.f32 1.442695, %v861_v55 }
 0x29b   : > { %v877_v58 = vpop.permute.xlu0 %876 }
 0x29c   : > { %2197 = vpow2.f32 %v864_v57  ;;  %1972 = vmatprep.subr.mxu0 %v877_v58 }
 0x29d   : > { %1973 = vmatpush3.msra.mxu0 %v877_v58  ;;  %2199 = vpow2.f32 %v862_v56 }
 0x29e   : > { %1977 = vmatprep.subr.msk.mxu0 %vm769_vm1, %v965_v59 }
 0x2a6   : > { %v2198_v60 = vpop.eup %2197 }
 0x2a7   : > { %v869_v61 = vsel %vm769_vm1, %v2198_v60, 0.0  ;;  %v2200_v62 = vpop.eup %2199 }
 0x2a8   : > { %870 = vadd.xlane.f32.xlu1 %v869_v61  ;;  %v866_v63 = vsel %vm769_vm1, %v2200_v62, 0.0 }
 0x2ac   : > { %867 = vadd.xlane.f32.xlu1 %v866_v63 }
 0x2bd   : > { %962 = vrot.lane.b32.xlu1 %v2761_v47, %s2309_s26 }
 0x335   : > { %v871_v1 = vpop.xlane.xlu1 %870 }
 0x336   : > { %2201 = vrcp.f32 %v871_v1 }
 0x339   : > { %v868_v2 = vpop.xlane.xlu1 %867 }
 0x33a   : > { %2203 = vrcp.f32 %v868_v2 }
 0x33d   : > { %v963_v7 = vpop.permute.xlu1 %962 }
 0x340   : > { %v2202_v3 = vpop.eup %2201 }
 0x341   : > { %v875_v6 = vmul.f32 %v2202_v3, %v2198_v60 }
 0x344   : > { %v2204_v4 = vpop.eup %2203 }
 0x345   : > { %v874_v5 = vmul.f32 %v2204_v4, %v2200_v62 }
 0x347   : > { %1974 = vmatprep.mubr.msk.f32.mxu0 %vm769_vm1, %v874_v5 }
 0x348   : > { %1975 = vmatmul.mubr.msk.f32.vlgmr.msra.gmra.mrb[4].mxu0 %vm769_vm1, %v875_v6 }
 0x349   : > { %1978 = vmatpush3.xpose.msk.msra.mxu0 %vm769_vm1, %v965_v59  ;;  %1979 = vmatprep.mubr.msk.f32.mxu0 %vm769_vm1, %v961_v0 }
 0x34c   : > { %1980 = vmatmul.mubr.msk.f32.vlgmr.msra.gmra.mrb[6].mxu0 %vm769_vm1, %v963_v7 }
 0x41b   : > { %v2780_v8 = vpop.f32.mrb[4].mxu0 }
 0x41c   : > { %v2782_v9 = vpop.f32.mrb[5].mxu0 }
 0x41f   : > { %v1981_v10 = vpop.f32.mrb[6].mxu0 }
 0x420   : > { %v1038_v11 = vpop.f32.mrb[7].mxu0  ;;  %v1050_v12 = vsel %vm769_vm1, %v1981_v10, -inf }
 0x421   : > { %1051 = vmax.xlane.f32.xlu1 %v1050_v12  ;;  %v1047_v13 = vsel %vm769_vm1, %v1038_v11, -inf }
 0x422   : > { %1048 = vmax.xlane.f32.xlu0 %v1047_v13 }
 0x432   : > { %1157 = vrot.lane.b32.xlu1 %v2753_v46, %s2311_s14 }
 0x436   : > { %1153 = vrot.lane.b32.xlu1 %v2746_v33, %s2311_s14 }
 0x43a   : > { %1155 = vrot.lane.b32.xlu1 %v2761_v47, %s2311_s14  ;;  %s2849_s14 = scalar_lea.hbm %s2908_s8, %s1814_s20 }
 0x4ae   : > { %v1052_v14 = vpop.xlane.xlu1 %1051 }
 0x4af   : > { %v1054_v15 = vsub.f32 %v1981_v10, %v1052_v14  ;;  %v1049_v16 = vpop.xlane.xlu0 %1048 }
 0x4b0   : > { %v1053_v17 = vsub.f32 %v1038_v11, %v1049_v16 }
 0x4b1   : > { %v1057_v18 = vmul.f32 1.442695, %v1054_v15 }
 0x4b2   : > { %v1055_v19 = vmul.f32 1.442695, %v1053_v17  ;;  %v1158_v27 = vpop.permute.xlu1 %1157 }
 0x4b3   : > { %2205 = vpow2.f32 %v1057_v18 }
 0x4b4   : > { %2207 = vpow2.f32 %v1055_v19 }
 0x4b6   : > { %v1154_v30 = vpop.permute.xlu1 %1153 }
 0x4ba   : > { %v1156_v34 = vpop.permute.xlu1 %1155 }
 0x4bd   : > { %v2206_v20 = vpop.eup %2205 }
 0x4be   : > { %v1062_v21 = vsel %vm769_vm1, %v2206_v20, 0.0  ;;  %v2208_v22 = vpop.eup %2207 }
 0x4bf   : > { %1063 = vadd.xlane.f32.xlu0 %v1062_v21  ;;  %v1059_v23 = vsel %vm769_vm1, %v2208_v22, 0.0 }
 0x4c3   : > { %1060 = vadd.xlane.f32.xlu0 %v1059_v23  ;;  %v1573_v23 = vld [vmem:[%s2906_s6 + $0x10] sm:$0xff] }
 0x4d9   : > { %1069 = vrot.lane.b32.xlu0 %v2753_v46, %s2312_s12 }
 0x54c   : > { %v1064_v24 = vpop.xlane.xlu0 %1063 }
 0x54d   : > { %2209 = vrcp.f32 %v1064_v24 }
 0x550   : > { %v1061_v25 = vpop.xlane.xlu0 %1060 }
 0x551   : > { %2211 = vrcp.f32 %v1061_v25  ;;  %v1574_v25 = vld [vmem:[%s2906_s6 + $0x18] sm:$0xff] }
 0x554   : > { %v1070_v26 = vpop.permute.xlu0 %1069 }
 0x555   : > { %1982 = vmatprep.subr.mxu0 %v1070_v26 }
 0x556   : > { %1983 = vmatpush3.msra.mxu0 %v1070_v26  ;;  %v2126_v26 = vpack.c.bf16 %v1574_v25, %v1573_v23 }
 0x557   : > { %1987 = vmatprep.subr.msk.mxu0 %vm769_vm1, %v1158_v27  ;;  %v2210_v28 = vpop.eup %2209 }
 0x558   : > { %v1068_v32 = vmul.f32 %v2210_v28, %v2206_v20 }
 0x55b   : > { %v2212_v29 = vpop.eup %2211 }
 0x55c   : > { %v1067_v31 = vmul.f32 %v2212_v29, %v2208_v22  ;;  %v1572_v22 = vld [vmem:[%s2906_s6 + $0x8] sm:$0xff] }
 0x55e   : > { %1984 = vmatprep.mubr.msk.f32.mxu0 %vm769_vm1, %v1067_v31 }
 0x55f   : > { %1985 = vmatmul.mubr.msk.f32.vlgmr.msra.gmra.mrb[8].mxu0 %vm769_vm1, %v1068_v32 }
 0x560   : > { %1988 = vmatpush3.xpose.msk.msra.mxu0 %vm769_vm1, %v1158_v27  ;;  %1989 = vmatprep.mubr.msk.f32.mxu0 %vm769_vm1, %v1154_v30 }
 0x563   : > { %1990 = vmatmul.mubr.msk.f32.vlgmr.msra.gmra.mrb[10].mxu0 %vm769_vm1, %v1156_v34 }
 0x632   : > { %v1986_v35 = vpop.f32.mrb[8].mxu0 }
 0x633   : > { %v1144_v36 = vpop.f32.mrb[9].mxu0 }
 0x636   : > { %v1991_v37 = vpop.f32.mrb[10].mxu0 }
 0x637   : > { %v1231_v38 = vpop.f32.mrb[11].mxu0  ;;  %v1243_v39 = vsel %vm769_vm1, %v1991_v37, -inf }
 0x638   : > { %1244 = vmax.xlane.f32.xlu1 %v1243_v39  ;;  %v1240_v40 = vsel %vm769_vm1, %v1231_v38, -inf }
 0x639   : > { %1241 = vmax.xlane.f32.xlu0 %v1240_v40 }
 0x649   : > { %1350 = vrot.lane.b32.xlu1 %v2753_v46, %s2313_s19 }
 0x64d   : > { %1346 = vrot.lane.b32.xlu1 %v2746_v33, %s2313_s19 }
 0x651   : > { %1348 = vrot.lane.b32.xlu1 %v2761_v47, %s2313_s19  ;;  %s2318_s19 = smov 24  }
 0x6c5   : > { %v1245_v41 = vpop.xlane.xlu1 %1244 }
 0x6c6   : > { %v1247_v42 = vsub.f32 %v1991_v37, %v1245_v41  ;;  %v1242_v43 = vpop.xlane.xlu0 %1241 }
 0x6c7   : > { %v1246_v44 = vsub.f32 %v1231_v38, %v1242_v43 }
 0x6c8   : > { %v1250_v45 = vmul.f32 1.442695, %v1247_v42 }
 0x6c9   : > { %v1248_v48 = vmul.f32 1.442695, %v1246_v44  ;;  %v1351_v54 = vpop.permute.xlu1 %1350 }
 0x6ca   : > { %2213 = vpow2.f32 %v1250_v45 }
 0x6cb   : > { %2215 = vpow2.f32 %v1248_v48 }
 0x6cd   : > { %v1347_v57 = vpop.permute.xlu1 %1346 }
 0x6d1   : > { %v1349_v60 = vpop.permute.xlu1 %1348 }
 0x6d4   : > { %v2214_v49 = vpop.eup %2213 }
 0x6d5   : > { %v1255_v50 = vsel %vm769_vm1, %v2214_v49, 0.0  ;;  %v2216_v51 = vpop.eup %2215 }
 0x6d6   : > { %1256 = vadd.xlane.f32.xlu0 %v1255_v50  ;;  %v1252_v52 = vsel %vm769_vm1, %v2216_v51, 0.0 }
 0x6da   : > { %1253 = vadd.xlane.f32.xlu0 %v1252_v52 }
 0x6f0   : > { %1262 = vrot.lane.b32.xlu0 %v2753_v46, %s2314_s21  ;;  %s336_s21 = sand.u32 1, %s2291_s28  }
 0x6f1   : > { %s2853_s12 = scalar_lea.sflag [#allocation3], %s336_s21 }
 0x763   : > { %v1257_v33 = vpop.xlane.xlu0 %1256 }
 0x764   : > { %2217 = vrcp.f32 %v1257_v33 }
 0x767   : > { %v1254_v47 = vpop.xlane.xlu0 %1253 }
 0x768   : > { %2219 = vrcp.f32 %v1254_v47 }
 0x76b   : > { %v1263_v53 = vpop.permute.xlu0 %1262 }
 0x76c   : > { %1992 = vmatprep.subr.mxu0 %v1263_v53 }
 0x76d   : > { %1993 = vmatpush3.msra.mxu0 %v1263_v53 }
 0x76e   : > { %1997 = vmatprep.subr.msk.mxu0 %vm769_vm1, %v1351_v54  ;;  %v2218_v55 = vpop.eup %2217 }
 0x76f   : > { %v1261_v59 = vmul.f32 %v2218_v55, %v2214_v49 }
 0x772   : > { %v2220_v56 = vpop.eup %2219 }
 0x773   : > { %v1260_v58 = vmul.f32 %v2220_v56, %v2216_v51 }
 0x775   : > { %1994 = vmatprep.mubr.msk.f32.mxu0 %vm769_vm1, %v1260_v58 }
 0x776   : > { %1995 = vmatmul.mubr.msk.f32.vlgmr.msra.gmra.mrb[12].mxu0 %vm769_vm1, %v1261_v59 }
 0x777   : > { %1998 = vmatpush3.xpose.msk.msra.mxu0 %vm769_vm1, %v1351_v54  ;;  %1999 = vmatprep.mubr.msk.f32.mxu0 %vm769_vm1, %v1347_v57 }
 0x77a   : > { %2000 = vmatmul.mubr.msk.f32.vlgmr.msra.gmra.mrb[14].mxu0 %vm769_vm1, %v1349_v60 }
 0x849   : > { %v1996_v61 = vpop.f32.mrb[12].mxu0 }
 0x84a   : > { %v1337_v62 = vpop.f32.mrb[13].mxu0 }
 0x84d   : > { %v2001_v63 = vpop.f32.mrb[14].mxu0 }
 0x84e   : > { %v1424_v0 = vpop.f32.mrb[15].mxu0  ;;  %v1436_v1 = vsel %vm769_vm1, %v2001_v63, -inf }
 0x84f   : > { %1437 = vmax.xlane.f32.xlu1 %v1436_v1  ;;  %v1433_v2 = vsel %vm769_vm1, %v1424_v0, -inf }
 0x850   : > { %1434 = vmax.xlane.f32.xlu0 %v1433_v2 }
 0x860   : > { %1541 = vrot.lane.b32.xlu1 %v1144_v36, %s2315_s22 }
 0x864   : > { %1543 = vrot.lane.b32.xlu1 %v1986_v35, %s2315_s22 }
 0x868   : > { %1549 = vrot.lane.b32.xlu1 %v1337_v62, %s2316_s23 }
 0x8dc   : > { %v1438_v3 = vpop.xlane.xlu1 %1437 }
 0x8dd   : > { %v1440_v4 = vsub.f32 %v2001_v63, %v1438_v3  ;;  %v1435_v5 = vpop.xlane.xlu0 %1434 }
 0x8de   : > { %v1439_v6 = vsub.f32 %v1424_v0, %v1435_v5 }
 0x8df   : > { %v1443_v7 = vmul.f32 1.442695, %v1440_v4 }
 0x8e0   : > { %v1441_v10 = vmul.f32 1.442695, %v1439_v6  ;;  %v1542_v29 = vpop.permute.xlu1 %1541 }
 0x8e1   : > { %2221 = vpow2.f32 %v1443_v7  ;;  %v1563_v34 = vsel %vm769_vm1, %v2782_v9, %v1542_v29  ;;  %v1805_v9 = vld [vmem:[%s2907_s7] ss:$0 sm:$0xff] }
 0x8e2   : > { %2223 = vpow2.f32 %v1441_v10 }
 0x8e4   : > { %v1544_v30 = vpop.permute.xlu1 %1543 }
 0x8e5   : > { %v1564_v36 = vsel %vm769_vm1, %v2780_v8, %v1544_v30 }
 0x8e8   : > { %v1550_v32 = vpop.permute.xlu1 %1549 }
 0x8e9   : > { %v1566_v37 = vsel %vm1565_vm2, %v1563_v34, %v1550_v32 }
 0x8eb   : > { %v2222_v11 = vpop.eup %2221 }
 0x8ec   : > { %v1448_v12 = vsel %vm769_vm1, %v2222_v11, 0.0  ;;  %v2224_v13 = vpop.eup %2223 }
 0x8ed   : > { %1449 = vadd.xlane.f32.xlu0 %v1448_v12  ;;  %v1445_v14 = vsel %vm769_vm1, %v2224_v13, 0.0 }
 0x8f1   : > { %1446 = vadd.xlane.f32.xlu0 %v1445_v14 }
 0x907   : > { %1455 = vrot.lane.b32.xlu0 %v2753_v46, %s2317_s24  ;;  %v1571_v46 = vld [vmem:[%s2906_s6] sm:$0xff] }
 0x908   : > { %v2122_v24 = vpack.c.bf16 %v1572_v22, %v1571_v46 }
 0x90a   : > { %2123 = vmatprep.subr.bf16.mxu0 %v2122_v24 }
 0x90b   : > { %1551 = vrot.lane.b32.xlu0 %v1996_v61, %s2316_s23  ;;  %2125 = vmatpush3.bf16.msra.mxu0 %v2122_v24  ;;  %s1777_s23 = sshll.u32 %s336_s21, 4 }
 0x90c   : > { %2127 = vmatprep.subr.bf16.mxu0 %v2126_v26  ;;  %s338_s11 = scalar_lea.vmem [#allocation2], %s1777_s23 }
 0x90d   : > { %s1681_s2 = sshll.u32 %s338_s11, 4  ;;  %s2844_s2 = int_to_ptr.vmem [resolvable:$true] %s1681_s2 }
 0x90e   : > { %s2229_s30 = scalar_lea.vmem %s2844_s2, 256 }
 0x90f   : > { %2129 = vmatpush3.bf16.msra.mxu0 %v2126_v26  ;;  %p2230_p12 = scmp.ne.s32.totalorder %s2844_s2, %s2229_s30 }
 0x911   : > { %p2231_p13 = pnand %p2230_p12, %p2406_p4 }
 0x913   : > { %p2232_p0 = pneg %p2231_p13 }
 0x97a   : > { %v1450_v15 = vpop.xlane.xlu0 %1449 }
 0x97b   : > { %2225 = vrcp.f32 %v1450_v15 }
 0x97e   : > { %v1447_v16 = vpop.xlane.xlu0 %1446 }
 0x97f   : > { %2227 = vrcp.f32 %v1447_v16 }
 0x982   : > { %v1456_v17 = vpop.permute.xlu0 %1455 }
 0x983   : > { %2002 = vmatprep.subr.mxu1 %v1456_v17 }
 0x984   : > { %2003 = vmatpush3.msra.mxu1 %v1456_v17 }
 0x985   : > { %v2226_v18 = vpop.eup %2225 }
 0x986   : > { %v1454_v21 = vmul.f32 %v2226_v18, %v2222_v11  ;;  %v1552_v31 = vpop.permute.xlu0 %1551 }
 0x987   : > { %v1567_v39 = vsel %vm1565_vm2, %v1564_v36, %v1552_v31 }
 0x989   : > { %v2228_v19 = vpop.eup %2227 }
 0x98a   : > { %v1453_v20 = vmul.f32 %v2228_v19, %v2224_v13 }
 0x98c   : > { %2004 = vmatprep.mubr.msk.f32.mxu1 %vm769_vm1, %v1453_v20 }
 0x98d   : > { %2005 = vmatmul.mubr.msk.f32.vlgmr.msra.gmra.mrb[6].mxu1 %vm769_vm1, %v1454_v21 }
 0xa60   : > { %v2006_v27 = vpop.f32.mrb[6].mxu1 }
 0xa61   : > { %1559 = vrot.lane.b32.xlu0 %v2006_v27, %s2318_s19  ;;  %v1530_v28 = vpop.f32.mrb[7].mxu1 }
 0xa62   : > { %1557 = vrot.lane.b32.xlu1 %v1530_v28, %s2318_s19  ;;  %s2319_s19 = smov [#allocation2]  }
 0xa63   : > { %s2233_s23 = sshll.u32 %s2319_s19, 4  ;;  %s2234_s23 = int_to_ptr.vmem [resolvable:$false] %s2233_s23 }
 0xa64   : > { %s2235_s24 = scalar_lea.vmem %s2234_s23, 512  ;;  %p2236_p1 = scmp.lt.s32.totalorder %s2844_s2, %s2234_s23 }
 0xa65   : > { %p2237_p2 = scmp.lt.s32.totalorder %s2235_s24, %s2229_s30 }
 0xa67   : > { %p2238_p3 = por %p2237_p2, %p2236_p1 }
 0xa69   : > { %p2239_p5 = pnand %p2238_p3, %p2232_p0 }
 0xad3   : > { %v1560_v35 = vpop.permute.xlu0 %1559 }
 0xad4   : > { %v1558_v38 = vpop.permute.xlu1 %1557  ;;  %v1570_v41 = vsel %vm1568_vm3, %v1567_v39, %v1560_v35 }
 0xad5   : > { %v1569_v40 = vsel %vm1568_vm3, %v1566_v37, %v1558_v38 }
 0xad6   : > { %2015 = vmatprep.mubr.msk.f32.mxu0 %vm374_vm0, %v1569_v40 }
 0xad7   : > { %2016 = vmatmul.mubr.msk.f32.vlgmr.msra.gmra.mrb[16].mxu0 %vm374_vm0, %v1570_v41 }
 0xbaa   : > { %v2017_v8 = vpop.f32.mrb[16].mxu0 }
 0xbab   : > { %v1660_v42 = vadd.f32 %v2017_v8, %v1805_v9  ;;  %v1654_v43 = vpop.f32.mrb[17].mxu0 }
 0xbac   : > { %v1655_v44 = vadd.f32 %v1805_v9, %v1654_v43 }
 0xbad   : > { %1664 = vst.msk [vmem:[%s338_s11 + $0x8] sm:$0xff] %vm374_vm0, %v1660_v42 }
 0xbae   : > { %1663 = vst.msk [vmem:[%s338_s11] sm:$0xff] %vm374_vm0, %v1655_v44 }
 0xbaf   : > { %2242 = shalt.err (!%p2239_p5)
}
 0xbb0   : > { %s2243_s21 = scalar_lea.hbm %s2849_s14, 256  ;;  %s2247_s20 = scalar_lea.hbm %s2908_s8, 512 }
 0xbb1   : > { %p2244_p6 = scmp.ne.s32.totalorder %s2849_s14, %s2243_s21  ;;  %p2248_p10 = scmp.lt.u32.totalorder %s2849_s14, %s2908_s8 }
 0xbb2   : > { %p2249_p11 = scmp.lt.u32.totalorder %s2247_s20, %s2243_s21  ;;  %p2251_p13 = scmp.lt.u32.totalorder %s2243_s21, %s2849_s14 }
 0xbb3   : > { %p2245_p7 = pnand %p2244_p6, %p2406_p4 }
 0xbb4   : > { %p2250_p12 = por %p2249_p11, %p2248_p10 }
 0xbb5   : > { %p2246_p9 = pneg %p2245_p7 }
 0xbb6   : > { %p2252_p0 = por %p2251_p13, %p2250_p12 }
 0xbb8   : > { %p2253_p1 = pnand %p2252_p0, %p2246_p9 }
 0xbba   : > { %2256 = shalt.err (!%p2253_p1)
}
 0xbbb   : > { %s2320_s30 = smov 128  }
 0xbbc   : > { %2131 = dma.vmem_to_hbm [thread:$0]  (%p2406_p4), %s2844_s2, 256, %s2849_s14, %s2853_s12, %s2320_s30, %s2320_s30, %s2315_s22  }
 0xbbd PF: > { %p2137_p2 = scmp.ge.s32.totalorder %s2307_s10, 2  ;;  %s1696_s19 = sand.u32 1, %s2287_s27  }
 0xbbe   : > { %s1697_s23 = scalar_lea.sflag [#allocation3], %s1696_s19 }
 0xbbf   : > { %p2134_p3 = pnand %p2137_p2, %p2413_p8 }
 0xbc1   : > { %2282 = dma.done.wait (!%p2134_p3), %s1697_s23, 256  }
 0xbc2   : > { %2284 = vsyncadd (!%p2134_p3), %s1697_s23, 4294967040  ;;  %s21_s10 = sadd.s32 1, %s2307_s10   ;;  %s2913_s27 = smov %s2291_s28 }
 0xbc3   : > { %p18_p5 = scmp.ge.s32.totalorder %s21_s10, 4   ;;  %s2914_s28 = smov %s2295_s29 }
 0xbc4   : > { %s2915_s29 = smov %s2419_s18  ;;  %s2916_s30 = smov %s2303_s9 }
 0xbc5   : > { %s2917_s9 = smov %s2919_s13  ;;  %20 = sbr.rel (!%p18_p5) target bundleno = 6 (0x6), region = 90 }
 0xbcc   :  { %1702 = vsyncpa [#allocation3], 1 }
 0xbcd   :  { %1704 = vsyncpa [#allocation3 + $0x1], 1 }

</bundles_post_ra>
